<compile_context>
chip_gen: v6e
topology: v6e:2x2x1
jax: 0.10.0
libtpu: 0.0.40
codegen_flags: <defaults>
</compile_context>

<pallas_src>
import functools

import jax
import jax.numpy as jnp
from jax.experimental import pallas as pl
from jax.experimental.pallas import tpu as pltpu


# ----------------------------------------------------------------------------
# Kernels
# ----------------------------------------------------------------------------
def _transform_kernel(x_ref, w_ref, o_ref):
    # XW tile: (tm, Cin_p) @ (Cin_p, Cout_p) on the MXU, f32 accumulate, bf16 out.
    o_ref[...] = jnp.dot(
        x_ref[...], w_ref[...], preferred_element_type=jnp.float32
    ).astype(o_ref.dtype)


def _propagate_kernel(a_ref, xw_ref, b_ref, o_ref, acc_ref, *, activation):
    # Computes act(A_hat @ XW + b) for one (row-block, reduction-block) grid point.
    k = pl.program_id(1)

    @pl.when(k == 0)
    def _():
        acc_ref[...] = jnp.zeros_like(acc_ref)

    acc_ref[...] += jnp.dot(
        a_ref[...], xw_ref[...], preferred_element_type=jnp.float32
    )

    @pl.when(k == pl.num_programs(1) - 1)
    def _():
        z = acc_ref[...] + b_ref[...]          # bias once per output tile (f32)
        if activation == "relu":
            z = jnp.maximum(z, 0.0)
        else:                                  # "sigmoid"
            z = jax.nn.sigmoid(z)
        o_ref[...] = z.astype(o_ref.dtype)


# ----------------------------------------------------------------------------
# Tiled pallas_call wrappers
# ----------------------------------------------------------------------------
_VMEM_LIMIT = 32 * 1024 * 1024  # explicit, safe on v5e (16MiB default) and v7x (64MiB phys)


def _feature_transform(x_p, w_p, tm):
    n_p, cin_p = x_p.shape
    cout_p = w_p.shape[1]
    return pl.pallas_call(
        _transform_kernel,
        out_shape=jax.ShapeDtypeStruct((n_p, cout_p), jnp.bfloat16),
        grid_spec=pltpu.PrefetchScalarGridSpec(
            num_scalar_prefetch=0,
            grid=(n_p // tm,),
            in_specs=[
                pl.BlockSpec((tm, cin_p), lambda i: (i, 0)),
                pl.BlockSpec((cin_p, cout_p), lambda i: (0, 0)),
            ],
            out_specs=pl.BlockSpec((tm, cout_p), lambda i: (i, 0)),
        ),
        compiler_params=pltpu.CompilerParams(
            dimension_semantics=("parallel",),
            vmem_limit_bytes=_VMEM_LIMIT,
        ),
    )(x_p, w_p)


def _gcn_propagate(a_p, xw_p, b_p, tm, tk, activation, out_dtype):
    n_p = a_p.shape[0]
    cp = xw_p.shape[1]
    kernel = functools.partial(_propagate_kernel, activation=activation)
    return pl.pallas_call(
        kernel,
        out_shape=jax.ShapeDtypeStruct((n_p, cp), out_dtype),
        grid_spec=pltpu.PrefetchScalarGridSpec(
            num_scalar_prefetch=0,
            grid=(n_p // tm, n_p // tk),              # reduction axis last
            in_specs=[
                pl.BlockSpec((tm, tk), lambda i, k: (i, k)),   # A_hat tile (bf16)
                pl.BlockSpec((tk, cp), lambda i, k: (k, 0)),   # XW tile  (bf16)
                pl.BlockSpec((1, cp), lambda i, k: (0, 0)),    # bias (f32, reused)
            ],
            out_specs=pl.BlockSpec((tm, cp), lambda i, k: (i, 0)),
            scratch_shapes=[pltpu.VMEM((tm, cp), jnp.float32)],
        ),
        compiler_params=pltpu.CompilerParams(
            dimension_semantics=("parallel", "arbitrary"),
            vmem_limit_bytes=_VMEM_LIMIT,
        ),
    )(a_p, xw_p, b_p)


# ----------------------------------------------------------------------------
# Full forward
# ----------------------------------------------------------------------------
def _round_up(x, m):
    return (x + m - 1) // m * m


def _pad2(a, rows, cols):
    return jnp.pad(a, ((0, rows - a.shape[0]), (0, cols - a.shape[1])))


def vge_forward(a_hat, x, w1, b1, w2, b2):
    n, cin = x.shape
    hid = w1.shape[1]
    cout = w2.shape[1]

    # Lane-dense padding (all last dims -> multiples of 128, rows -> multiple of 128).
    n_p = _round_up(n, 128)
    cin_p = _round_up(cin, 128)
    hid_p = _round_up(hid, 128)
    cout_p = _round_up(cout, 128)

    # Tile plan (fits comfortably in VMEM on v5e/v6e/v7x with double buffering).
    tm = 256 if n_p % 256 == 0 else 128
    if n_p % 512 == 0:
        tk = 512
    elif n_p % 256 == 0:
        tk = 256
    else:
        tk = 128

    # Zero-padded, bf16 MXU operands (biases stay f32).
    a_p = _pad2(a_hat, n_p, n_p).astype(jnp.bfloat16)
    x_p = _pad2(x, n_p, cin_p).astype(jnp.bfloat16)
    w1_p = _pad2(w1, cin_p, hid_p).astype(jnp.bfloat16)
    b1_p = _pad2(b1, 1, hid_p).astype(jnp.float32)
    w2_p = _pad2(w2, hid_p, cout_p).astype(jnp.bfloat16)
    b2_p = _pad2(b2, 1, cout_p).astype(jnp.float32)

    # Layer 1: H = relu(A_hat @ (X @ W1) + b1)
    xw1 = _feature_transform(x_p, w1_p, tm)
    h = _gcn_propagate(a_p, xw1, b1_p, tm, tk, "relu", jnp.bfloat16)

    # Layer 2: Z = sigmoid(A_hat @ (H @ W2) + b2)
    hw2 = _feature_transform(h, w2_p, tm)
    z = _gcn_propagate(a_p, hw2, b2_p, tm, tk, "sigmoid", jnp.float32)

    return z[:n, :cout]


# ----------------------------------------------------------------------------
# Glue: dense GCN normalization (matches torch_geometric GCNConv defaults:
# add_self_loops=True, normalize=True), built once in plain JAX.
# ----------------------------------------------------------------------------
def gcn_norm_dense(edge_index, num_nodes):
    row, col = edge_index[0], edge_index[1]            # src, dst
    loop = jnp.arange(num_nodes, dtype=edge_index.dtype)
    row = jnp.concatenate([row, loop])
    col = jnp.concatenate([col, loop])
    w = jnp.ones(row.shape[0], jnp.float32)
    deg = jnp.zeros((num_nodes,), jnp.float32).at[col].add(w)
    deg_inv_sqrt = jnp.where(deg > 0.0, 1.0 / jnp.sqrt(deg), 0.0)
    norm = deg_inv_sqrt[row] * w * deg_inv_sqrt[col]
    # out[i] = sum_{edge j->i} norm * xW[j]  =>  A_hat[dst, src] = norm
    a_hat = jnp.zeros((num_nodes, num_nodes), jnp.float32).at[col, row].add(norm)
    return a_hat


# Pure-JAX f32 reference of the same forward (for a sanity check).
def vge_ref(a_hat, x, w1, b1, w2, b2):
    h = jnp.maximum(a_hat @ (x @ w1) + b1, 0.0)
    return jax.nn.sigmoid(a_hat @ (h @ w2) + b2)


if __name__ == "__main__":
    # Small shapes consistent with the module.
    num_nodes = 8
    in_channels = 4
    hidden_channels = 32
    out_channels = 16

    key = jax.random.PRNGKey(0)
    kx, kw1, kw2, ke = jax.random.split(key, 4)

    # Node features.
    x = jax.random.normal(kx, (num_nodes, in_channels), jnp.float32)

    # Deterministic small graph: ring + a few random extra edges.
    src = jnp.arange(num_nodes, dtype=jnp.int32)
    dst = (src + 1) % num_nodes
    extra_src = jax.random.randint(ke, (4,), 0, num_nodes, dtype=jnp.int32)
    extra_dst = (extra_src + 3) % num_nodes
    edge_index = jnp.stack(
        [jnp.concatenate([src, extra_src]), jnp.concatenate([dst, extra_dst])]
    )  # [2, E]

    # GCNConv parameters (glorot-style uniform weights, zero bias), deterministic.
    lim1 = (6.0 / (in_channels + hidden_channels)) ** 0.5
    w1 = jax.random.uniform(kw1, (in_channels, hidden_channels), jnp.float32,
                            -lim1, lim1)
    b1 = jnp.zeros((1, hidden_channels), jnp.float32)
    lim2 = (6.0 / (hidden_channels + out_channels)) ** 0.5
    w2 = jax.random.uniform(kw2, (hidden_channels, out_channels), jnp.float32,
                            -lim2, lim2)
    b2 = jnp.zeros((1, out_channels), jnp.float32)

    a_hat = gcn_norm_dense(edge_index, num_nodes)

    vge = jax.jit(vge_forward)
    out = vge(a_hat, x, w1, b1, w2, b2)
    out = jax.block_until_ready(out)

    ref = vge_ref(a_hat, x, w1, b1, w2, b2)
    assert out.shape == (num_nodes, out_channels)
    # Loose tolerance: kernel uses bf16 MXU operands with f32 accumulation.
    assert jnp.allclose(out, ref, atol=2e-2, rtol=2e-2)

    print("KERNEL_OK")
</pallas_src>

<mosaic_0001>
module attributes {stable_mosaic.version = 11 : i64} {
  func.func @_transform_kernel(%arg0: i32, %arg1: memref<128x128xbf16, #tpu.memory_space<vmem>>, %arg2: memref<128x128xbf16, #tpu.memory_space<vmem>>, %arg3: memref<128x128xbf16, #tpu.memory_space<vmem>>) attributes {dimension_semantics = [#tpu.dimension_semantics<parallel>], iteration_bounds = array<i64: 1>, scalar_prefetch = 0 : i64, scratch_operands = 0 : i64, tpu.core_type = #tpu.core_type<tc>, window_params = [{transform_indices = @transform_0, window_bounds = array<i64: 128, 128>}, {pipeline_mode = #tpu.pipeline_mode<synchronous>, transform_indices = @transform_1, window_bounds = array<i64: 128, 128>}, {transform_indices = @transform_2, window_bounds = array<i64: 128, 128>}]} {
    %c0 = arith.constant 0 : index
    %c0_0 = arith.constant 0 : index
    %0 = vector.load %arg1[%c0, %c0_0] : memref<128x128xbf16, #tpu.memory_space<vmem>>, vector<128x128xbf16>
    %c0_1 = arith.constant 0 : index
    %c0_2 = arith.constant 0 : index
    %1 = vector.load %arg2[%c0_1, %c0_2] : memref<128x128xbf16, #tpu.memory_space<vmem>>, vector<128x128xbf16>
    %cst = arith.constant dense<0.000000e+00> : vector<128x128xf32>
    %2 = tpu.matmul %0, %1, %cst {dimension_numbers = #tpu.dot_dimension_numbers<[1], [0], [0], [1], [0, 0, 1, 1], [], []>} : vector<128x128xbf16>, vector<128x128xbf16>, vector<128x128xf32> -> vector<128x128xf32>
    %3 = arith.truncf %2 : vector<128x128xf32> to vector<128x128xbf16>
    %c0_3 = arith.constant 0 : index
    %c0_4 = arith.constant 0 : index
    %4 = vector.load %arg3[%c0_3, %c0_4] : memref<128x128xbf16, #tpu.memory_space<vmem>>, vector<128x128xbf16>
    tpu.vector_store %arg3[%c0_3, %c0_4], %3 {strides = array<i32>} : memref<128x128xbf16, #tpu.memory_space<vmem>>, vector<128x128xbf16>,
    return
  }
  func.func @transform_0(%arg0: i32) -> (i32, i32) {
    %c0_i32 = arith.constant 0 : i32
    %c0_i32_0 = arith.constant 0 : i32
    return %arg0, %c0_i32 : i32, i32
  }
  func.func @transform_1(%arg0: i32) -> (i32, i32) {
    %c0_i32 = arith.constant 0 : i32
    %c0_i32_0 = arith.constant 0 : i32
    %c0_i32_1 = arith.constant 0 : i32
    return %c0_i32, %c0_i32_0 : i32, i32
  }
  func.func @transform_2(%arg0: i32) -> (i32, i32) {
    %c0_i32 = arith.constant 0 : i32
    %c0_i32_0 = arith.constant 0 : i32
    return %arg0, %c0_i32 : i32, i32
  }
}

module attributes {stable_mosaic.version = 11 : i64} {
  func.func @_propagate_kernel(%arg0: i32, %arg1: i32, %arg2: memref<128x128xbf16, #tpu.memory_space<vmem>>, %arg3: memref<128x128xbf16, #tpu.memory_space<vmem>>, %arg4: memref<1x128xf32, #tpu.memory_space<vmem>>, %arg5: memref<128x128xf32, #tpu.memory_space<vmem>>, %arg6: memref<128x128xf32, #tpu.memory_space<vmem>>) attributes {dimension_semantics = [#tpu.dimension_semantics<parallel>, #tpu.dimension_semantics<arbitrary>], iteration_bounds = array<i64: 1, 1>, scalar_prefetch = 0 : i64, scratch_operands = 1 : i64, tpu.core_type = #tpu.core_type<tc>, window_params = [{transform_indices = @transform_0, window_bounds = array<i64: 128, 128>}, {transform_indices = @transform_1, window_bounds = array<i64: 128, 128>}, {pipeline_mode = #tpu.pipeline_mode<synchronous>, transform_indices = @transform_2, window_bounds = array<i64: 1, 128>}, {transform_indices = @transform_3, window_bounds = array<i64: 128, 128>}]} {
    %c0_i32 = arith.constant 0 : i32
    %0 = arith.cmpi eq, %arg1, %c0_i32 : i32
    %1 = arith.extui %0 : i1 to i32
    %c0_i32_0 = arith.constant 0 : i32
    %2 = arith.cmpi ne, %1, %c0_i32_0 : i32
    scf.if %2 {
      %cst_10 = arith.constant 0.000000e+00 : f32
      %12 = vector.broadcast %cst_10 : f32 to vector<128x128xf32>
      %c0_11 = arith.constant 0 : index
      %c0_12 = arith.constant 0 : index
      %13 = vector.load %arg6[%c0_11, %c0_12] : memref<128x128xf32, #tpu.memory_space<vmem>>, vector<128x128xf32>
      tpu.vector_store %arg6[%c0_11, %c0_12], %12 {strides = array<i32>} : memref<128x128xf32, #tpu.memory_space<vmem>>, vector<128x128xf32>,
    } else {
    }
    %c0 = arith.constant 0 : index
    %c0_1 = arith.constant 0 : index
    %3 = vector.load %arg6[%c0, %c0_1] : memref<128x128xf32, #tpu.memory_space<vmem>>, vector<128x128xf32>
    %c0_2 = arith.constant 0 : index
    %c0_3 = arith.constant 0 : index
    %4 = vector.load %arg2[%c0_2, %c0_3] : memref<128x128xbf16, #tpu.memory_space<vmem>>, vector<128x128xbf16>
    %c0_4 = arith.constant 0 : index
    %c0_5 = arith.constant 0 : index
    %5 = vector.load %arg3[%c0_4, %c0_5] : memref<128x128xbf16, #tpu.memory_space<vmem>>, vector<128x128xbf16>
    %cst = arith.constant dense<0.000000e+00> : vector<128x128xf32>
    %6 = tpu.matmul %4, %5, %cst {dimension_numbers = #tpu.dot_dimension_numbers<[1], [0], [0], [1], [0, 0, 1, 1], [], []>} : vector<128x128xbf16>, vector<128x128xbf16>, vector<128x128xf32> -> vector<128x128xf32>
    %7 = arith.addf %3, %6 : vector<128x128xf32>
    %c0_6 = arith.constant 0 : index
    %c0_7 = arith.constant 0 : index
    %8 = vector.load %arg6[%c0_6, %c0_7] : memref<128x128xf32, #tpu.memory_space<vmem>>, vector<128x128xf32>
    tpu.vector_store %arg6[%c0_6, %c0_7], %7 {strides = array<i32>} : memref<128x128xf32, #tpu.memory_space<vmem>>, vector<128x128xf32>,
    %c0_i32_8 = arith.constant 0 : i32
    %9 = arith.cmpi eq, %arg1, %c0_i32_8 : i32
    %10 = arith.extui %9 : i1 to i32
    %c0_i32_9 = arith.constant 0 : i32
    %11 = arith.cmpi ne, %10, %c0_i32_9 : i32
    scf.if %11 {
      %c0_10 = arith.constant 0 : index
      %c0_11 = arith.constant 0 : index
      %12 = vector.load %arg6[%c0_10, %c0_11] : memref<128x128xf32, #tpu.memory_space<vmem>>, vector<128x128xf32>
      %c0_12 = arith.constant 0 : index
      %c0_13 = arith.constant 0 : index
      %13 = vector.load %arg4[%c0_12, %c0_13] : memref<1x128xf32, #tpu.memory_space<vmem>>, vector<1x128xf32>
      %14 = vector.broadcast %13 : vector<1x128xf32> to vector<128x128xf32>
      %15 = arith.addf %12, %14 : vector<128x128xf32>
      %16 = arith.negf %15 : vector<128x128xf32>
      %17 = math.exp %16 : vector<128x128xf32>
      %cst_14 = arith.constant 1.000000e+00 : f32
      %18 = vector.broadcast %cst_14 : f32 to vector<128x128xf32>
      %19 = arith.addf %18, %17 : vector<128x128xf32>
      %20 = arith.divf %18, %19 : vector<128x128xf32>
      %c0_15 = arith.constant 0 : index
      %c0_16 = arith.constant 0 : index
      %21 = vector.load %arg5[%c0_15, %c0_16] : memref<128x128xf32, #tpu.memory_space<vmem>>, vector<128x128xf32>
      tpu.vector_store %arg5[%c0_15, %c0_16], %20 {strides = array<i32>} : memref<128x128xf32, #tpu.memory_space<vmem>>, vector<128x128xf32>,
    } else {
    }
    return
  }
  func.func @transform_0(%arg0: i32, %arg1: i32) -> (i32, i32) {
    %c0_i32 = arith.constant 0 : i32
    return %arg0, %arg1 : i32, i32
  }
  func.func @transform_1(%arg0: i32, %arg1: i32) -> (i32, i32) {
    %c0_i32 = arith.constant 0 : i32
    %c0_i32_0 = arith.constant 0 : i32
    return %arg1, %c0_i32 : i32, i32
  }
  func.func @transform_2(%arg0: i32, %arg1: i32) -> (i32, i32) {
    %c0_i32 = arith.constant 0 : i32
    %c0_i32_0 = arith.constant 0 : i32
    %c0_i32_1 = arith.constant 0 : i32
    return %c0_i32, %c0_i32_0 : i32, i32
  }
  func.func @transform_3(%arg0: i32, %arg1: i32) -> (i32, i32) {
    %c0_i32 = arith.constant 0 : i32
    %c0_i32_0 = arith.constant 0 : i32
    return %arg0, %c0_i32 : i32, i32
  }
}

module attributes {stable_mosaic.version = 11 : i64} {
  func.func @_propagate_kernel(%arg0: i32, %arg1: i32, %arg2: memref<128x128xbf16, #tpu.memory_space<vmem>>, %arg3: memref<128x128xbf16, #tpu.memory_space<vmem>>, %arg4: memref<1x128xf32, #tpu.memory_space<vmem>>, %arg5: memref<128x128xbf16, #tpu.memory_space<vmem>>, %arg6: memref<128x128xf32, #tpu.memory_space<vmem>>) attributes {dimension_semantics = [#tpu.dimension_semantics<parallel>, #tpu.dimension_semantics<arbitrary>], iteration_bounds = array<i64: 1, 1>, scalar_prefetch = 0 : i64, scratch_operands = 1 : i64, tpu.core_type = #tpu.core_type<tc>, window_params = [{transform_indices = @transform_0, window_bounds = array<i64: 128, 128>}, {transform_indices = @transform_1, window_bounds = array<i64: 128, 128>}, {pipeline_mode = #tpu.pipeline_mode<synchronous>, transform_indices = @transform_2, window_bounds = array<i64: 1, 128>}, {transform_indices = @transform_3, window_bounds = array<i64: 128, 128>}]} {
    %c0_i32 = arith.constant 0 : i32
    %0 = arith.cmpi eq, %arg1, %c0_i32 : i32
    %1 = arith.extui %0 : i1 to i32
    %c0_i32_0 = arith.constant 0 : i32
    %2 = arith.cmpi ne, %1, %c0_i32_0 : i32
    scf.if %2 {
      %cst_10 = arith.constant 0.000000e+00 : f32
      %12 = vector.broadcast %cst_10 : f32 to vector<128x128xf32>
      %c0_11 = arith.constant 0 : index
      %c0_12 = arith.constant 0 : index
      %13 = vector.load %arg6[%c0_11, %c0_12] : memref<128x128xf32, #tpu.memory_space<vmem>>, vector<128x128xf32>
      tpu.vector_store %arg6[%c0_11, %c0_12], %12 {strides = array<i32>} : memref<128x128xf32, #tpu.memory_space<vmem>>, vector<128x128xf32>,
    } else {
    }
    %c0 = arith.constant 0 : index
    %c0_1 = arith.constant 0 : index
    %3 = vector.load %arg6[%c0, %c0_1] : memref<128x128xf32, #tpu.memory_space<vmem>>, vector<128x128xf32>
    %c0_2 = arith.constant 0 : index
    %c0_3 = arith.constant 0 : index
    %4 = vector.load %arg2[%c0_2, %c0_3] : memref<128x128xbf16, #tpu.memory_space<vmem>>, vector<128x128xbf16>
    %c0_4 = arith.constant 0 : index
    %c0_5 = arith.constant 0 : index
    %5 = vector.load %arg3[%c0_4, %c0_5] : memref<128x128xbf16, #tpu.memory_space<vmem>>, vector<128x128xbf16>
    %cst = arith.constant dense<0.000000e+00> : vector<128x128xf32>
    %6 = tpu.matmul %4, %5, %cst {dimension_numbers = #tpu.dot_dimension_numbers<[1], [0], [0], [1], [0, 0, 1, 1], [], []>} : vector<128x128xbf16>, vector<128x128xbf16>, vector<128x128xf32> -> vector<128x128xf32>
    %7 = arith.addf %3, %6 : vector<128x128xf32>
    %c0_6 = arith.constant 0 : index
    %c0_7 = arith.constant 0 : index
    %8 = vector.load %arg6[%c0_6, %c0_7] : memref<128x128xf32, #tpu.memory_space<vmem>>, vector<128x128xf32>
    tpu.vector_store %arg6[%c0_6, %c0_7], %7 {strides = array<i32>} : memref<128x128xf32, #tpu.memory_space<vmem>>, vector<128x128xf32>,
    %c0_i32_8 = arith.constant 0 : i32
    %9 = arith.cmpi eq, %arg1, %c0_i32_8 : i32
    %10 = arith.extui %9 : i1 to i32
    %c0_i32_9 = arith.constant 0 : i32
    %11 = arith.cmpi ne, %10, %c0_i32_9 : i32
    scf.if %11 {
      %c0_10 = arith.constant 0 : index
      %c0_11 = arith.constant 0 : index
      %12 = vector.load %arg6[%c0_10, %c0_11] : memref<128x128xf32, #tpu.memory_space<vmem>>, vector<128x128xf32>
      %c0_12 = arith.constant 0 : index
      %c0_13 = arith.constant 0 : index
      %13 = vector.load %arg4[%c0_12, %c0_13] : memref<1x128xf32, #tpu.memory_space<vmem>>, vector<1x128xf32>
      %14 = vector.broadcast %13 : vector<1x128xf32> to vector<128x128xf32>
      %15 = arith.addf %12, %14 : vector<128x128xf32>
      %cst_14 = arith.constant 0.000000e+00 : f32
      %16 = vector.broadcast %cst_14 : f32 to vector<128x128xf32>
      %17 = arith.maximumf %15, %16 : vector<128x128xf32>
      %18 = arith.truncf %17 : vector<128x128xf32> to vector<128x128xbf16>
      %c0_15 = arith.constant 0 : index
      %c0_16 = arith.constant 0 : index
      %19 = vector.load %arg5[%c0_15, %c0_16] : memref<128x128xbf16, #tpu.memory_space<vmem>>, vector<128x128xbf16>
      tpu.vector_store %arg5[%c0_15, %c0_16], %18 {strides = array<i32>} : memref<128x128xbf16, #tpu.memory_space<vmem>>, vector<128x128xbf16>,
    } else {
    }
    return
  }
  func.func @transform_0(%arg0: i32, %arg1: i32) -> (i32, i32) {
    %c0_i32 = arith.constant 0 : i32
    return %arg0, %arg1 : i32, i32
  }
  func.func @transform_1(%arg0: i32, %arg1: i32) -> (i32, i32) {
    %c0_i32 = arith.constant 0 : i32
    %c0_i32_0 = arith.constant 0 : i32
    return %arg1, %c0_i32 : i32, i32
  }
  func.func @transform_2(%arg0: i32, %arg1: i32) -> (i32, i32) {
    %c0_i32 = arith.constant 0 : i32
    %c0_i32_0 = arith.constant 0 : i32
    %c0_i32_1 = arith.constant 0 : i32
    return %c0_i32, %c0_i32_0 : i32, i32
  }
  func.func @transform_3(%arg0: i32, %arg1: i32) -> (i32, i32) {
    %c0_i32 = arith.constant 0 : i32
    %c0_i32_0 = arith.constant 0 : i32
    return %arg0, %c0_i32 : i32, i32
  }
}

</mosaic_0001>

<bundles_post_ra>
// kernel: vge_forward.4
= control target key start
LH: loop header
LB: loop body
LE: loop exit
PB: predicated region body
PF: predicated region fallthrough
CT: control target
= control target key end

     0   :  { %s583_s1 = inlined_call_operand.vmem [shape: bf16[128,128], index: 1, kind: input, shape index: {}]   ;;  %s584_s0 = inlined_call_operand.vmem [shape: bf16[128,128], index: 0, kind: input, shape index: {}]   ;;  %s585_s2 = inlined_call_operand.vmem [shape: bf16[128,128], index: 2, kind: output, shape index: {}]  }
   0x1   :  { %v480_v0 = vld [vmem:[%s583_s1 + $0x38] sm:$0xff]   ;;  %v481_v1 = vld [vmem:[%s583_s1 + $0x30] sm:$0xff]   ;;  %v482_v2 = vld [vmem:[%s583_s1 + $0x28] sm:$0xff]  }
   0x2   :  { %432 = vmatprep.subr.bf16.mxu0 %v480_v0  ;;  %464 = vmatprep.subr.bf16.mxu1 %v480_v0  ;;  %v483_v3 = vld [vmem:[%s583_s1 + $0x20] sm:$0xff]   ;;  %v484_v6 = vld [vmem:[%s583_s1 + $0x18] sm:$0xff]   ;;  %v485_v7 = vld [vmem:[%s583_s1 + $0x10] sm:$0xff]  }
   0x3   :  { %433 = vmatpush3.bf16.msra.mxu0 %v480_v0  ;;  %472 = vmatpush3.bf16.msra.mxu1 %v480_v0  ;;  %v488_v4 = vld [vmem:[%s584_s0] sm:$0xff]   ;;  %v486_v8 = vld [vmem:[%s583_s1 + $0x8] sm:$0xff]   ;;  %v492_v12 = vld [vmem:[%s584_s0 + $0x10] sm:$0xff]  }
   0x4   :  { %434 = vmatprep.subr.bf16.mxu0 %v481_v1  ;;  %465 = vmatprep.subr.bf16.mxu1 %v481_v1  ;;  %v489_v5 = vld [vmem:[%s584_s0 + $0x20] sm:$0xff]   ;;  %v490_v10 = vld [vmem:[%s584_s0 + $0x8] sm:$0xff]   ;;  %v493_v13 = vld [vmem:[%s584_s0 + $0x30] sm:$0xff]  }
   0x5   :  { %448 = vmatprep.mubr.bf16.mxu0 %v488_v4  ;;  %456 = vmatprep.mubr.bf16.mxu1 %v489_v5  ;;  %v487_v9 = vld [vmem:[%s583_s1] sm:$0xff]   ;;  %v491_v11 = vld [vmem:[%s584_s0 + $0x28] sm:$0xff]   ;;  %v494_v14 = vld [vmem:[%s584_s0 + $0x18] sm:$0xff]  }
   0x6   :  { %v495_v15 = vld [vmem:[%s584_s0 + $0x38] sm:$0xff]  }
   0x7   :  { %435 = vmatpush3.bf16.msra.mxu0 %v481_v1  ;;  %473 = vmatpush3.bf16.msra.mxu1 %v481_v1 }
   0x8   :  { %436 = vmatprep.subr.bf16.mxu0 %v482_v2  ;;  %466 = vmatprep.subr.bf16.mxu1 %v482_v2 }
   0xb   :  { %437 = vmatpush3.bf16.msra.mxu0 %v482_v2  ;;  %474 = vmatpush3.bf16.msra.mxu1 %v482_v2 }
   0xc   :  { %438 = vmatprep.subr.bf16.mxu0 %v483_v3  ;;  %467 = vmatprep.subr.bf16.mxu1 %v483_v3 }
   0xf   :  { %439 = vmatpush3.bf16.msra.mxu0 %v483_v3  ;;  %475 = vmatpush3.bf16.msra.mxu1 %v483_v3 }
  0x10   :  { %440 = vmatprep.subr.bf16.mxu0 %v484_v6  ;;  %468 = vmatprep.subr.bf16.mxu1 %v484_v6 }
  0x13   :  { %441 = vmatpush3.bf16.msra.mxu0 %v484_v6  ;;  %476 = vmatpush3.bf16.msra.mxu1 %v484_v6 }
  0x14   :  { %442 = vmatprep.subr.bf16.mxu0 %v485_v7  ;;  %469 = vmatprep.subr.bf16.mxu1 %v485_v7 }
  0x17   :  { %443 = vmatpush3.bf16.msra.mxu0 %v485_v7  ;;  %477 = vmatpush3.bf16.msra.mxu1 %v485_v7 }
  0x18   :  { %444 = vmatprep.subr.bf16.mxu0 %v486_v8  ;;  %470 = vmatprep.subr.bf16.mxu1 %v486_v8 }
  0x1b   :  { %445 = vmatpush3.bf16.msra.mxu0 %v486_v8  ;;  %478 = vmatpush3.bf16.msra.mxu1 %v486_v8 }
  0x1c   :  { %446 = vmatprep.subr.bf16.mxu0 %v487_v9  ;;  %471 = vmatprep.subr.bf16.mxu1 %v487_v9 }
  0x1f   :  { %447 = vmatpush3.bf16.msra.mxu0 %v487_v9  ;;  %479 = vmatpush3.bf16.msra.mxu1 %v487_v9 }
  0x22   :  { %449 = vmatmul.mubr.bf16.vlgmr.msra.gmra.mxu0 %v490_v10  ;;  %457 = vmatmul.mubr.bf16.vlgmr.msra.gmra.mxu1 %v491_v11 }
  0x23   :  { %452 = vmatprep.mubr.bf16.mxu0 %v492_v12  ;;  %460 = vmatprep.mubr.bf16.mxu1 %v493_v13 }
  0x2a   :  { %453 = vmatmul.mubr.bf16.gmra.mxu0 %v494_v14  ;;  %461 = vmatmul.mubr.bf16.gmra.mxu1 %v495_v15 }
  0xe2   :  { %v450_v16 = vpop.f32.mrf.mxu0  ;;  %v458_v17 = vpop.f32.mrf.mxu1 }
  0xe4   :  { %v174_v18 = vpop.f32.mrf.mxu0  ;;  %v206_v19 = vpop.f32.mrf.mxu1 }
  0xe6   :  { %v451_v20 = vpop.f32.mrf.mxu0  ;;  %v459_v21 = vpop.f32.mrf.mxu1 }
  0xe7   :  { %v377_v22 = vpack.c.bf16 %v451_v20, %v450_v16  ;;  %v397_v23 = vpack.c.bf16 %v459_v21, %v458_v17 }
  0xe8   :  { %v177_v24 = vpop.f32.mrf.mxu0  ;;  %v209_v25 = vpop.f32.mrf.mxu1 }
  0xe9   :  { %409 = vst [vmem:[%s585_s2 + $0x8] sm:$0xff] %v377_v22   ;;  %413 = vst [vmem:[%s585_s2 + $0x28] sm:$0xff] %v397_v23   ;;  %v372_v26 = vpack.c.bf16 %v177_v24, %v174_v18  ;;  %v392_v27 = vpack.c.bf16 %v209_v25, %v206_v19 }
  0xea   :  { %v454_v28 = vpop.f32.mrf.mxu0  ;;  %v462_v29 = vpop.f32.mrf.mxu1 }
  0xeb   :  { %373 = vst [vmem:[%s585_s2] sm:$0xff] %v372_v26   ;;  %412 = vst [vmem:[%s585_s2 + $0x20] sm:$0xff] %v392_v27  }
  0xec   :  { %v190_v30 = vpop.f32.mrf.mxu0  ;;  %v222_v31 = vpop.f32.mrf.mxu1 }
  0xee   :  { %v455_v32 = vpop.f32.mrf.mxu0  ;;  %v463_v33 = vpop.f32.mrf.mxu1 }
  0xef   :  { %v387_v34 = vpack.c.bf16 %v455_v32, %v454_v28  ;;  %v407_v35 = vpack.c.bf16 %v463_v33, %v462_v29 }
  0xf0   :  { %v193_v36 = vpop.f32.mrf.mxu0  ;;  %v225_v37 = vpop.f32.mrf.mxu1 }
  0xf1   :  { %411 = vst [vmem:[%s585_s2 + $0x18] sm:$0xff] %v387_v34   ;;  %415 = vst [vmem:[%s585_s2 + $0x38] sm:$0xff] %v407_v35   ;;  %v382_v38 = vpack.c.bf16 %v193_v36, %v190_v30  ;;  %v402_v39 = vpack.c.bf16 %v225_v37, %v222_v31 }
  0xf3   :  { %410 = vst [vmem:[%s585_s2 + $0x10] sm:$0xff] %v382_v38   ;;  %414 = vst [vmem:[%s585_s2 + $0x30] sm:$0xff] %v402_v39  }

// kernel: vge_forward.7
= control target key start
LH: loop header
LB: loop body
LE: loop exit
PB: predicated region body
PF: predicated region fallthrough
CT: control target
= control target key end

     0   :  { %s762_s1 = inlined_call_operand.vmem [shape: bf16[128,128], index: 1, kind: input, shape index: {}]   ;;  %s763_s0 = inlined_call_operand.vmem [shape: bf16[128,128], index: 0, kind: input, shape index: {}]   ;;  %s764_s2 = inlined_call_operand.vmem [shape: f32[1,128], index: 2, kind: input, shape index: {}]   ;;  %s765_s3 = inlined_call_operand.vmem [shape: f32[128,128], index: 3, kind: output, shape index: {}]  }
   0x1   :  { %v563_v0 = vld [vmem:[%s762_s1 + $0x38] sm:$0xff]   ;;  %v564_v1 = vld [vmem:[%s762_s1 + $0x30] sm:$0xff]   ;;  %v565_v2 = vld [vmem:[%s762_s1 + $0x28] sm:$0xff]  }
   0x2   :  { %515 = vmatprep.subr.bf16.mxu0 %v563_v0  ;;  %547 = vmatprep.subr.bf16.mxu1 %v563_v0  ;;  %v566_v3 = vld [vmem:[%s762_s1 + $0x20] sm:$0xff]   ;;  %v567_v6 = vld [vmem:[%s762_s1 + $0x18] sm:$0xff]   ;;  %v568_v7 = vld [vmem:[%s762_s1 + $0x10] sm:$0xff]  }
   0x3   :  { %516 = vmatpush3.bf16.msra.mxu0 %v563_v0  ;;  %555 = vmatpush3.bf16.msra.mxu1 %v563_v0  ;;  %v571_v4 = vld [vmem:[%s763_s0] sm:$0xff]   ;;  %v569_v8 = vld [vmem:[%s762_s1 + $0x8] sm:$0xff]   ;;  %v575_v12 = vld [vmem:[%s763_s0 + $0x10] sm:$0xff]  }
   0x4   :  { %517 = vmatprep.subr.bf16.mxu0 %v564_v1  ;;  %548 = vmatprep.subr.bf16.mxu1 %v564_v1  ;;  %v572_v5 = vld [vmem:[%s763_s0 + $0x20] sm:$0xff]   ;;  %v573_v10 = vld [vmem:[%s763_s0 + $0x8] sm:$0xff]   ;;  %v576_v13 = vld [vmem:[%s763_s0 + $0x30] sm:$0xff]  }
   0x5   :  { %531 = vmatprep.mubr.bf16.mxu0 %v571_v4  ;;  %539 = vmatprep.mubr.bf16.mxu1 %v572_v5  ;;  %v570_v9 = vld [vmem:[%s762_s1] sm:$0xff]   ;;  %v574_v11 = vld [vmem:[%s763_s0 + $0x28] sm:$0xff]   ;;  %v577_v14 = vld [vmem:[%s763_s0 + $0x18] sm:$0xff]  }
   0x6   :  { %v578_v15 = vld [vmem:[%s763_s0 + $0x38] sm:$0xff]   ;;  %v482_v16 = vld [vmem:[%s764_s2] ss:$0 sm:$0xff] }
   0x7   :  { %518 = vmatpush3.bf16.msra.mxu0 %v564_v1  ;;  %556 = vmatpush3.bf16.msra.mxu1 %v564_v1 }
   0x8   :  { %519 = vmatprep.subr.bf16.mxu0 %v565_v2  ;;  %549 = vmatprep.subr.bf16.mxu1 %v565_v2 }
   0xb   :  { %520 = vmatpush3.bf16.msra.mxu0 %v565_v2  ;;  %557 = vmatpush3.bf16.msra.mxu1 %v565_v2 }
   0xc   :  { %521 = vmatprep.subr.bf16.mxu0 %v566_v3  ;;  %550 = vmatprep.subr.bf16.mxu1 %v566_v3 }
   0xf   :  { %522 = vmatpush3.bf16.msra.mxu0 %v566_v3  ;;  %558 = vmatpush3.bf16.msra.mxu1 %v566_v3 }
  0x10   :  { %523 = vmatprep.subr.bf16.mxu0 %v567_v6  ;;  %551 = vmatprep.subr.bf16.mxu1 %v567_v6 }
  0x13   :  { %524 = vmatpush3.bf16.msra.mxu0 %v567_v6  ;;  %559 = vmatpush3.bf16.msra.mxu1 %v567_v6 }
  0x14   :  { %525 = vmatprep.subr.bf16.mxu0 %v568_v7  ;;  %552 = vmatprep.subr.bf16.mxu1 %v568_v7 }
  0x17   :  { %526 = vmatpush3.bf16.msra.mxu0 %v568_v7  ;;  %560 = vmatpush3.bf16.msra.mxu1 %v568_v7 }
  0x18   :  { %527 = vmatprep.subr.bf16.mxu0 %v569_v8  ;;  %553 = vmatprep.subr.bf16.mxu1 %v569_v8 }
  0x1b   :  { %528 = vmatpush3.bf16.msra.mxu0 %v569_v8  ;;  %561 = vmatpush3.bf16.msra.mxu1 %v569_v8 }
  0x1c   :  { %529 = vmatprep.subr.bf16.mxu0 %v570_v9  ;;  %554 = vmatprep.subr.bf16.mxu1 %v570_v9 }
  0x1f   :  { %530 = vmatpush3.bf16.msra.mxu0 %v570_v9  ;;  %562 = vmatpush3.bf16.msra.mxu1 %v570_v9 }
  0x22   :  { %532 = vmatmul.mubr.bf16.vlgmr.msra.gmra.mxu0 %v573_v10  ;;  %540 = vmatmul.mubr.bf16.vlgmr.msra.gmra.mxu1 %v574_v11 }
  0x23   :  { %535 = vmatprep.mubr.bf16.mxu0 %v575_v12  ;;  %543 = vmatprep.mubr.bf16.mxu1 %v576_v13 }
  0x2a   :  { %536 = vmatmul.mubr.bf16.gmra.mxu0 %v577_v14  ;;  %544 = vmatmul.mubr.bf16.gmra.mxu1 %v578_v15 }
  0xe2   :  { %v533_v17 = vpop.f32.mrf.mxu0  ;;  %v541_v18 = vpop.f32.mrf.mxu1 }
  0xe3   :  { %v336_v19 = vadd.f32 %v533_v17, %v482_v16  ;;  %v344_v20 = vadd.f32 %v541_v18, %v482_v16 }
  0xe4   :  { %v213_v21 = vpop.f32.mrf.mxu0  ;;  %v245_v22 = vpop.f32.mrf.mxu1 }
  0xe5   :  { %v485_v23 = vmul.f32 -1.442695, %v336_v19  ;;  %v493_v24 = vmul.f32 -1.442695, %v344_v20  ;;  %v334_v25 = vadd.f32 %v482_v16, %v213_v21  ;;  %v342_v26 = vadd.f32 %v482_v16, %v245_v22 }
  0xe6   :  { %v534_v27 = vpop.f32.mrf.mxu0  ;;  %v542_v28 = vpop.f32.mrf.mxu1 }
  0xe7   :  { %579 = vpow2.f32 %v485_v23  ;;  %v483_v29 = vmul.f32 -1.442695, %v334_v25  ;;  %v491_v30 = vmul.f32 -1.442695, %v342_v26  ;;  %v337_v31 = vadd.f32 %v534_v27, %v482_v16 }
  0xe8   :  { %581 = vpow2.f32 %v493_v24  ;;  %v345_v32 = vadd.f32 %v542_v28, %v482_v16  ;;  %v216_v33 = vpop.f32.mrf.mxu0  ;;  %v248_v34 = vpop.f32.mrf.mxu1 }
  0xe9   :  { %583 = vpow2.f32 %v483_v29  ;;  %v486_v35 = vmul.f32 -1.442695, %v337_v31  ;;  %v335_v36 = vadd.f32 %v482_v16, %v216_v33  ;;  %v343_v37 = vadd.f32 %v482_v16, %v248_v34 }
  0xea   :  { %585 = vpow2.f32 %v491_v30  ;;  %v494_v38 = vmul.f32 -1.442695, %v345_v32  ;;  %v537_v39 = vpop.f32.mrf.mxu0  ;;  %v545_v40 = vpop.f32.mrf.mxu1 }
  0xeb   :  { %587 = vpow2.f32 %v486_v35  ;;  %v484_v41 = vmul.f32 -1.442695, %v335_v36  ;;  %v492_v42 = vmul.f32 -1.442695, %v343_v37  ;;  %v340_v43 = vadd.f32 %v537_v39, %v482_v16 }
  0xec   :  { %589 = vpow2.f32 %v494_v38  ;;  %v348_v44 = vadd.f32 %v545_v40, %v482_v16  ;;  %v229_v45 = vpop.f32.mrf.mxu0  ;;  %v261_v46 = vpop.f32.mrf.mxu1 }
  0xed   :  { %591 = vpow2.f32 %v484_v41  ;;  %v489_v47 = vmul.f32 -1.442695, %v340_v43  ;;  %v338_v48 = vadd.f32 %v482_v16, %v229_v45  ;;  %v346_v49 = vadd.f32 %v482_v16, %v261_v46 }
  0xee   :  { %593 = vpow2.f32 %v492_v42  ;;  %v497_v50 = vmul.f32 -1.442695, %v348_v44  ;;  %v538_v51 = vpop.f32.mrf.mxu0  ;;  %v546_v52 = vpop.f32.mrf.mxu1 }
  0xef   :  { %595 = vpow2.f32 %v489_v47  ;;  %v487_v53 = vmul.f32 -1.442695, %v338_v48  ;;  %v495_v54 = vmul.f32 -1.442695, %v346_v49  ;;  %v341_v55 = vadd.f32 %v538_v51, %v482_v16 }
  0xf0   :  { %597 = vpow2.f32 %v497_v50  ;;  %v349_v56 = vadd.f32 %v546_v52, %v482_v16  ;;  %v232_v57 = vpop.f32.mrf.mxu0  ;;  %v264_v58 = vpop.f32.mrf.mxu1 }
  0xf1   :  { %599 = vpow2.f32 %v487_v53  ;;  %v490_v59 = vmul.f32 -1.442695, %v341_v55  ;;  %v339_v60 = vadd.f32 %v482_v16, %v232_v57  ;;  %v347_v61 = vadd.f32 %v482_v16, %v264_v58 }
  0xf2   :  { %601 = vpow2.f32 %v495_v54  ;;  %v498_v62 = vmul.f32 -1.442695, %v349_v56 }
  0xf3   :  { %603 = vpow2.f32 %v490_v59  ;;  %v488_v63 = vmul.f32 -1.442695, %v339_v60  ;;  %v496_v0 = vmul.f32 -1.442695, %v347_v61 }
  0xf4   :  { %v580_v1 = vpop.eup %579  ;;  %605 = vpow2.f32 %v498_v62 }
  0xf5   :  { %v582_v2 = vpop.eup %581  ;;  %v400_v3 = vadd.f32 1.0, %v580_v1  ;;  %607 = vpow2.f32 %v488_v63 }
  0xf6   :  { %v584_v4 = vpop.eup %583  ;;  %v408_v5 = vadd.f32 1.0, %v582_v2  ;;  %609 = vpow2.f32 %v496_v0 }
  0xf7   :  { %v586_v6 = vpop.eup %585  ;;  %611 = vrcp.f32 %v400_v3  ;;  %v398_v7 = vadd.f32 1.0, %v584_v4 }
  0xf8   :  { %v588_v8 = vpop.eup %587  ;;  %613 = vrcp.f32 %v408_v5  ;;  %v406_v9 = vadd.f32 1.0, %v586_v6 }
  0xf9   :  { %v590_v10 = vpop.eup %589  ;;  %615 = vrcp.f32 %v398_v7  ;;  %v401_v11 = vadd.f32 1.0, %v588_v8 }
  0xfa   :  { %v592_v12 = vpop.eup %591  ;;  %617 = vrcp.f32 %v406_v9  ;;  %v409_v13 = vadd.f32 1.0, %v590_v10 }
  0xfb   :  { %v594_v14 = vpop.eup %593  ;;  %619 = vrcp.f32 %v401_v11  ;;  %v399_v15 = vadd.f32 1.0, %v592_v12 }
  0xfc   :  { %v596_v16 = vpop.eup %595  ;;  %621 = vrcp.f32 %v409_v13  ;;  %v407_v17 = vadd.f32 1.0, %v594_v14 }
  0xfd   :  { %v598_v18 = vpop.eup %597  ;;  %623 = vrcp.f32 %v399_v15  ;;  %v404_v19 = vadd.f32 1.0, %v596_v16 }
  0xfe   :  { %v600_v20 = vpop.eup %599  ;;  %625 = vrcp.f32 %v407_v17  ;;  %v412_v21 = vadd.f32 1.0, %v598_v18 }
  0xff   :  { %v602_v22 = vpop.eup %601  ;;  %627 = vrcp.f32 %v404_v19  ;;  %v402_v23 = vadd.f32 1.0, %v600_v20 }
 0x100   :  { %v604_v24 = vpop.eup %603  ;;  %629 = vrcp.f32 %v412_v21  ;;  %v410_v25 = vadd.f32 1.0, %v602_v22 }
 0x101   :  { %v606_v26 = vpop.eup %605  ;;  %631 = vrcp.f32 %v402_v23  ;;  %v405_v27 = vadd.f32 1.0, %v604_v24 }
 0x102   :  { %v608_v28 = vpop.eup %607  ;;  %633 = vrcp.f32 %v410_v25  ;;  %v413_v29 = vadd.f32 1.0, %v606_v26 }
 0x103   :  { %v610_v30 = vpop.eup %609  ;;  %635 = vrcp.f32 %v405_v27  ;;  %v403_v31 = vadd.f32 1.0, %v608_v28 }
 0x104   :  { %v612_v32 = vpop.eup %611  ;;  %637 = vrcp.f32 %v413_v29  ;;  %v411_v33 = vadd.f32 1.0, %v610_v30 }
 0x105   :  { %v614_v34 = vpop.eup %613  ;;  %448 = vst [vmem:[%s765_s3 + $0x10] sm:$0xff] %v612_v32  ;;  %639 = vrcp.f32 %v403_v31 }
 0x106   :  { %v616_v35 = vpop.eup %615  ;;  %456 = vst [vmem:[%s765_s3 + $0x50] sm:$0xff] %v614_v34  ;;  %641 = vrcp.f32 %v411_v33 }
 0x107   :  { %v618_v36 = vpop.eup %617  ;;  %446 = vst [vmem:[%s765_s3] sm:$0xff] %v616_v35 }
 0x108   :  { %v620_v37 = vpop.eup %619  ;;  %454 = vst [vmem:[%s765_s3 + $0x40] sm:$0xff] %v618_v36 }
 0x109   :  { %v622_v38 = vpop.eup %621  ;;  %449 = vst [vmem:[%s765_s3 + $0x18] sm:$0xff] %v620_v37 }
 0x10a   :  { %v624_v39 = vpop.eup %623  ;;  %457 = vst [vmem:[%s765_s3 + $0x58] sm:$0xff] %v622_v38 }
 0x10b   :  { %v626_v40 = vpop.eup %625  ;;  %447 = vst [vmem:[%s765_s3 + $0x8] sm:$0xff] %v624_v39 }
 0x10c   :  { %v628_v41 = vpop.eup %627  ;;  %455 = vst [vmem:[%s765_s3 + $0x48] sm:$0xff] %v626_v40 }
 0x10d   :  { %v630_v42 = vpop.eup %629  ;;  %452 = vst [vmem:[%s765_s3 + $0x30] sm:$0xff] %v628_v41 }
 0x10e   :  { %v632_v43 = vpop.eup %631  ;;  %460 = vst [vmem:[%s765_s3 + $0x70] sm:$0xff] %v630_v42 }
 0x10f   :  { %v634_v44 = vpop.eup %633  ;;  %450 = vst [vmem:[%s765_s3 + $0x20] sm:$0xff] %v632_v43 }
 0x110   :  { %v636_v45 = vpop.eup %635  ;;  %458 = vst [vmem:[%s765_s3 + $0x60] sm:$0xff] %v634_v44 }
 0x111   :  { %v638_v46 = vpop.eup %637  ;;  %453 = vst [vmem:[%s765_s3 + $0x38] sm:$0xff] %v636_v45 }
 0x112   :  { %v640_v47 = vpop.eup %639  ;;  %461 = vst [vmem:[%s765_s3 + $0x78] sm:$0xff] %v638_v46 }
 0x113   :  { %v642_v48 = vpop.eup %641  ;;  %451 = vst [vmem:[%s765_s3 + $0x28] sm:$0xff] %v640_v47 }
 0x114   :  { %459 = vst [vmem:[%s765_s3 + $0x68] sm:$0xff] %v642_v48 }

// kernel: vge_forward.5
= control target key start
LH: loop header
LB: loop body
LE: loop exit
PB: predicated region body
PF: predicated region fallthrough
CT: control target
= control target key end

     0   :  { %s721_s1 = inlined_call_operand.vmem [shape: bf16[128,128], index: 1, kind: input, shape index: {}]   ;;  %s722_s0 = inlined_call_operand.vmem [shape: bf16[128,128], index: 0, kind: input, shape index: {}]   ;;  %s723_s2 = inlined_call_operand.vmem [shape: f32[1,128], index: 2, kind: input, shape index: {}]   ;;  %s724_s3 = inlined_call_operand.vmem [shape: bf16[128,128], index: 3, kind: output, shape index: {}]  }
   0x1   :  { %v610_v0 = vld [vmem:[%s721_s1 + $0x38] sm:$0xff]   ;;  %v611_v1 = vld [vmem:[%s721_s1 + $0x30] sm:$0xff]   ;;  %v612_v2 = vld [vmem:[%s721_s1 + $0x28] sm:$0xff]  }
   0x2   :  { %562 = vmatprep.subr.bf16.mxu0 %v610_v0  ;;  %594 = vmatprep.subr.bf16.mxu1 %v610_v0  ;;  %v613_v3 = vld [vmem:[%s721_s1 + $0x20] sm:$0xff]   ;;  %v614_v6 = vld [vmem:[%s721_s1 + $0x18] sm:$0xff]   ;;  %v615_v7 = vld [vmem:[%s721_s1 + $0x10] sm:$0xff]  }
   0x3   :  { %563 = vmatpush3.bf16.msra.mxu0 %v610_v0  ;;  %602 = vmatpush3.bf16.msra.mxu1 %v610_v0  ;;  %v618_v4 = vld [vmem:[%s722_s0] sm:$0xff]   ;;  %v616_v8 = vld [vmem:[%s721_s1 + $0x8] sm:$0xff]   ;;  %v622_v12 = vld [vmem:[%s722_s0 + $0x10] sm:$0xff]  }
   0x4   :  { %564 = vmatprep.subr.bf16.mxu0 %v611_v1  ;;  %595 = vmatprep.subr.bf16.mxu1 %v611_v1  ;;  %v619_v5 = vld [vmem:[%s722_s0 + $0x20] sm:$0xff]   ;;  %v620_v10 = vld [vmem:[%s722_s0 + $0x8] sm:$0xff]   ;;  %v623_v13 = vld [vmem:[%s722_s0 + $0x30] sm:$0xff]  }
   0x5   :  { %578 = vmatprep.mubr.bf16.mxu0 %v618_v4  ;;  %586 = vmatprep.mubr.bf16.mxu1 %v619_v5  ;;  %v617_v9 = vld [vmem:[%s721_s1] sm:$0xff]   ;;  %v621_v11 = vld [vmem:[%s722_s0 + $0x28] sm:$0xff]   ;;  %v624_v14 = vld [vmem:[%s722_s0 + $0x18] sm:$0xff]  }
   0x6   :  { %v625_v15 = vld [vmem:[%s722_s0 + $0x38] sm:$0xff]   ;;  %v466_v16 = vld [vmem:[%s723_s2] ss:$0 sm:$0xff] }
   0x7   :  { %565 = vmatpush3.bf16.msra.mxu0 %v611_v1  ;;  %603 = vmatpush3.bf16.msra.mxu1 %v611_v1 }
   0x8   :  { %566 = vmatprep.subr.bf16.mxu0 %v612_v2  ;;  %596 = vmatprep.subr.bf16.mxu1 %v612_v2 }
   0xb   :  { %567 = vmatpush3.bf16.msra.mxu0 %v612_v2  ;;  %604 = vmatpush3.bf16.msra.mxu1 %v612_v2 }
   0xc   :  { %568 = vmatprep.subr.bf16.mxu0 %v613_v3  ;;  %597 = vmatprep.subr.bf16.mxu1 %v613_v3 }
   0xf   :  { %569 = vmatpush3.bf16.msra.mxu0 %v613_v3  ;;  %605 = vmatpush3.bf16.msra.mxu1 %v613_v3 }
  0x10   :  { %570 = vmatprep.subr.bf16.mxu0 %v614_v6  ;;  %598 = vmatprep.subr.bf16.mxu1 %v614_v6 }
  0x13   :  { %571 = vmatpush3.bf16.msra.mxu0 %v614_v6  ;;  %606 = vmatpush3.bf16.msra.mxu1 %v614_v6 }
  0x14   :  { %572 = vmatprep.subr.bf16.mxu0 %v615_v7  ;;  %599 = vmatprep.subr.bf16.mxu1 %v615_v7 }
  0x17   :  { %573 = vmatpush3.bf16.msra.mxu0 %v615_v7  ;;  %607 = vmatpush3.bf16.msra.mxu1 %v615_v7 }
  0x18   :  { %574 = vmatprep.subr.bf16.mxu0 %v616_v8  ;;  %600 = vmatprep.subr.bf16.mxu1 %v616_v8 }
  0x1b   :  { %575 = vmatpush3.bf16.msra.mxu0 %v616_v8  ;;  %608 = vmatpush3.bf16.msra.mxu1 %v616_v8 }
  0x1c   :  { %576 = vmatprep.subr.bf16.mxu0 %v617_v9  ;;  %601 = vmatprep.subr.bf16.mxu1 %v617_v9 }
  0x1f   :  { %577 = vmatpush3.bf16.msra.mxu0 %v617_v9  ;;  %609 = vmatpush3.bf16.msra.mxu1 %v617_v9 }
  0x22   :  { %579 = vmatmul.mubr.bf16.vlgmr.msra.gmra.mxu0 %v620_v10  ;;  %587 = vmatmul.mubr.bf16.vlgmr.msra.gmra.mxu1 %v621_v11 }
  0x23   :  { %582 = vmatprep.mubr.bf16.mxu0 %v622_v12  ;;  %590 = vmatprep.mubr.bf16.mxu1 %v623_v13 }
  0x2a   :  { %583 = vmatmul.mubr.bf16.gmra.mxu0 %v624_v14  ;;  %591 = vmatmul.mubr.bf16.gmra.mxu1 %v625_v15 }
  0xe2   :  { %v580_v17 = vpop.f32.mrf.mxu0  ;;  %v588_v18 = vpop.f32.mrf.mxu1 }
  0xe3   :  { %v336_v19 = vadd.f32 %v580_v17, %v466_v16  ;;  %v344_v20 = vadd.f32 %v588_v18, %v466_v16 }
  0xe4   :  { %v213_v21 = vpop.f32.mrf.mxu0  ;;  %v245_v22 = vpop.f32.mrf.mxu1 }
  0xe5   :  { %v334_v23 = vadd.f32 %v466_v16, %v213_v21  ;;  %v342_v24 = vadd.f32 %v466_v16, %v245_v22  ;;  %v352_v29 = vmax.f32 %v336_v19, 0.0  ;;  %v360_v30 = vmax.f32 %v344_v20, 0.0 }
  0xe6   :  { %v581_v25 = vpop.f32.mrf.mxu0  ;;  %v589_v26 = vpop.f32.mrf.mxu1 }
  0xe7   :  { %v337_v27 = vadd.f32 %v581_v25, %v466_v16  ;;  %v345_v28 = vadd.f32 %v589_v26, %v466_v16  ;;  %v350_v37 = vmax.f32 %v334_v23, 0.0  ;;  %v358_v38 = vmax.f32 %v342_v24, 0.0 }
  0xe8   :  { %v216_v31 = vpop.f32.mrf.mxu0  ;;  %v248_v32 = vpop.f32.mrf.mxu1 }
  0xe9   :  { %v353_v33 = vmax.f32 %v337_v27, 0.0  ;;  %v361_v34 = vmax.f32 %v345_v28, 0.0  ;;  %v335_v35 = vadd.f32 %v466_v16, %v216_v31  ;;  %v343_v36 = vadd.f32 %v466_v16, %v248_v32 }
  0xea   :  { %v584_v39 = vpop.f32.mrf.mxu0  ;;  %v592_v40 = vpop.f32.mrf.mxu1 }
  0xeb   :  { %v507_v41 = vpack.c.bf16 %v353_v33, %v352_v29  ;;  %v527_v42 = vpack.c.bf16 %v361_v34, %v360_v30  ;;  %v351_v43 = vmax.f32 %v335_v35, 0.0  ;;  %v359_v44 = vmax.f32 %v343_v36, 0.0 }
  0xec   :  { %v340_v45 = vadd.f32 %v584_v39, %v466_v16  ;;  %v348_v46 = vadd.f32 %v592_v40, %v466_v16  ;;  %v229_v47 = vpop.f32.mrf.mxu0  ;;  %v261_v48 = vpop.f32.mrf.mxu1 }
  0xed   :  { %539 = vst [vmem:[%s724_s3 + $0x8] sm:$0xff] %v507_v41   ;;  %543 = vst [vmem:[%s724_s3 + $0x28] sm:$0xff] %v527_v42   ;;  %v502_v49 = vpack.c.bf16 %v351_v43, %v350_v37  ;;  %v522_v50 = vpack.c.bf16 %v359_v44, %v358_v38  ;;  %v338_v51 = vadd.f32 %v466_v16, %v229_v47 }
  0xee   :  { %v346_v52 = vadd.f32 %v466_v16, %v261_v48  ;;  %v585_v53 = vpop.f32.mrf.mxu0  ;;  %v593_v54 = vpop.f32.mrf.mxu1  ;;  %v356_v57 = vmax.f32 %v340_v45, 0.0  ;;  %v364_v58 = vmax.f32 %v348_v46, 0.0 }
  0xef   :  { %503 = vst [vmem:[%s724_s3] sm:$0xff] %v502_v49   ;;  %542 = vst [vmem:[%s724_s3 + $0x20] sm:$0xff] %v522_v50   ;;  %v341_v55 = vadd.f32 %v585_v53, %v466_v16  ;;  %v349_v56 = vadd.f32 %v593_v54, %v466_v16  ;;  %v354_v1 = vmax.f32 %v338_v51, 0.0 }
  0xf0   :  { %v232_v59 = vpop.f32.mrf.mxu0  ;;  %v264_v60 = vpop.f32.mrf.mxu1  ;;  %v362_v2 = vmax.f32 %v346_v52, 0.0 }
  0xf1   :  { %v357_v61 = vmax.f32 %v341_v55, 0.0  ;;  %v365_v62 = vmax.f32 %v349_v56, 0.0  ;;  %v339_v63 = vadd.f32 %v466_v16, %v232_v59  ;;  %v347_v0 = vadd.f32 %v466_v16, %v264_v60 }
  0xf3   :  { %v517_v3 = vpack.c.bf16 %v357_v61, %v356_v57  ;;  %v537_v4 = vpack.c.bf16 %v365_v62, %v364_v58  ;;  %v355_v5 = vmax.f32 %v339_v63, 0.0  ;;  %v363_v6 = vmax.f32 %v347_v0, 0.0 }
  0xf5   :  { %541 = vst [vmem:[%s724_s3 + $0x18] sm:$0xff] %v517_v3   ;;  %545 = vst [vmem:[%s724_s3 + $0x38] sm:$0xff] %v537_v4   ;;  %v512_v7 = vpack.c.bf16 %v355_v5, %v354_v1  ;;  %v532_v8 = vpack.c.bf16 %v363_v6, %v362_v2 }
  0xf7   :  { %540 = vst [vmem:[%s724_s3 + $0x10] sm:$0xff] %v512_v7   ;;  %544 = vst [vmem:[%s724_s3 + $0x30] sm:$0xff] %v532_v8  }

</bundles_post_ra>
